<compile_context>
chip_gen: v5e
topology: v5e:2x2
jax: 0.10.0
libtpu: 0.0.40
codegen_flags: <defaults>
</compile_context>

<pallas_src>
import functools

import jax
import jax.numpy as jnp
from jax.experimental import pallas as pl
from jax.experimental.pallas import tpu as pltpu


# -----------------------------------------------------------------------------
# Fused kernel: focal + dice over (tile_n, L) heatmap rows and eos-weighted BCE
# over (tile_n, C1) class-embedding logits.  Emits one lane-dense (1, 8, 128)
# block of partial sums: lane 0 = focal, lane 1 = dice, lane 2 = bce.
# -----------------------------------------------------------------------------
def _fused_loss_kernel(pred_ref, tgt_ref, logit_ref, cls_ref, aux_ref, cw_ref,
                       part_ref, *, alpha, gamma, inv_l):
    # ---- heatmap focal + dice -------------------------------------------
    x = pred_ref[...].astype(jnp.float32)            # (T, L) logits
    t = tgt_ref[...].astype(jnp.float32)             # (T, L) targets in [0,1]
    aux = aux_ref[...]                               # (T, 2) [target_w, valid]
    tw = aux[:, 0:1]                                 # (T, 1)
    valid = aux[:, 1:2]                              # (T, 1)

    e = jnp.exp(-jnp.abs(x))                         # shared transcendental
    log1pe = jnp.log1p(e)
    ce = jnp.maximum(x, 0.0) - x * t + log1pe        # stable BCE-with-logits
    inv1pe = 1.0 / (1.0 + e)
    p = jnp.where(x >= 0, inv1pe, e * inv1pe)        # sigmoid derived from e

    p_t = p * t + (1.0 - p) * (1.0 - t)
    q = 1.0 - p_t
    if gamma == 2.0:
        mod = q * q                                  # avoid pow -> exp/log
    else:
        mod = q ** gamma
    alpha_t = alpha * t + (1.0 - alpha) * (1.0 - t)
    focal = alpha_t * mod * ce                       # (T, L)

    focal_row = jnp.sum(focal, axis=-1, keepdims=True) * inv_l   # mean over L
    num_row = jnp.sum(p * t, axis=-1, keepdims=True)
    den_row = jnp.sum(p + t, axis=-1, keepdims=True)              # folded sums
    dice_row = 1.0 - (2.0 * num_row + 1.0) / (den_row + 1.0)

    focal_s = jnp.sum(focal_row * tw, keepdims=True)   # (1, 1)
    dice_s = jnp.sum(dice_row * tw, keepdims=True)     # (1, 1)

    # ---- class-embedding BCE (one-hot built in-kernel) -------------------
    xl = logit_ref[...].astype(jnp.float32)          # (T, C1)
    cls = cls_ref[...]                               # (T, 1) int32 target class
    col = jax.lax.broadcasted_iota(jnp.int32, xl.shape, 1)
    tl = (col == cls).astype(jnp.float32)            # one-hot
    cel = jnp.maximum(xl, 0.0) - xl * tl + jnp.log1p(jnp.exp(-jnp.abs(xl)))
    bce_s = jnp.sum(cel * cw_ref[...] * valid, keepdims=True)     # (1, 1)

    # ---- pack partials into a lane-dense (8, 128) vreg --------------------
    lane = jax.lax.broadcasted_iota(jnp.int32, (8, 128), 1)
    packed = (jnp.where(lane == 0, focal_s, 0.0)
              + jnp.where(lane == 1, dice_s, 0.0)
              + jnp.where(lane == 2, bce_s, 0.0))
    part_ref[...] = packed[None]                     # (1, 8, 128)


def _pick_tile_n(n_rows, bytes_per_row_pair):
    """Largest multiple-of-8 row tile whose (pred+tgt) tile stays ~<= 8 MiB."""
    budget = 8 * 1024 * 1024
    t = budget // max(bytes_per_row_pair, 1)
    t = int(max(8, min(1024, t)))
    t -= t % 8
    n_pad8 = ((n_rows + 7) // 8) * 8
    return max(8, min(t, n_pad8))


# -----------------------------------------------------------------------------
# Module-level forward (glue in plain JAX, all heavy math in the fused kernel).
# -----------------------------------------------------------------------------
def pos_focal_dice_loss_bce_cls_emb_forward(outputs, targets, target_weight,
                                            cfg, *, alpha=0.25, gamma=2.0):
    """Equivalent of POS_FocalDiceLoss_bce_cls_emb.forward.

    outputs:  {'pred_logits': (B, Q, C+1), 'pred_masks': (B, Q, H, W)}
    targets:  {'heatmaps': (B, Q, H, W), 'visibility': (B, Q) in {0,1}}
    target_weight: (B, Q, 1)
    Returns dict of scalar losses already multiplied by weight_dict.
    """
    pred_logits = outputs['pred_logits']
    pred_masks = outputs['pred_masks']
    tgt_heatmaps = targets['heatmaps']
    visibility = targets['visibility']

    B, Q, H, W = pred_masks.shape
    C1 = pred_logits.shape[-1]
    num_classes = C1 - 1
    N = B * Q
    L = H * W
    assert L % 128 == 0, "H*W must be a multiple of 128 (TPU lane alignment)"

    # Keep original heatmap dtype (bf16 stays bf16); kernel upcasts to f32.
    pred_flat = pred_masks.reshape(N, L)
    tgt_flat = tgt_heatmaps.reshape(N, L)
    logits_flat = pred_logits.reshape(N, C1)

    tw = target_weight.reshape(N).astype(jnp.float32)
    if not cfg['use_target_weight']:
        tw = jnp.ones_like(tw)
    num_valid = jnp.maximum(jnp.sum(tw), 1.0)       # from un-padded weights

    # Direct matcher: target class of query i is i if visible else no-object.
    base_cls = jnp.broadcast_to(jnp.arange(Q, dtype=jnp.int32)[None, :], (B, Q))
    tgt_cls = jnp.where(visibility > 0, base_cls,
                        jnp.full_like(base_cls, num_classes)).reshape(N, 1)

    class_w = jnp.concatenate(
        [jnp.ones((num_classes,), jnp.float32),
         jnp.full((1,), float(cfg['eos_coef']), jnp.float32)]).reshape(1, C1)

    # aux rows: [target_weight, valid]; padded rows get zeros for both, so they
    # contribute nothing to any of the three partial sums.
    aux = jnp.stack([tw, jnp.ones((N,), jnp.float32)], axis=-1)   # (N, 2)

    bytes_pair = L * (pred_flat.dtype.itemsize + tgt_flat.dtype.itemsize)
    tile_n = _pick_tile_n(N, bytes_pair)
    n_pad = (-N) % tile_n
    if n_pad:
        pred_flat = jnp.pad(pred_flat, ((0, n_pad), (0, 0)))
        tgt_flat = jnp.pad(tgt_flat, ((0, n_pad), (0, 0)))
        logits_flat = jnp.pad(logits_flat, ((0, n_pad), (0, 0)))
        tgt_cls = jnp.pad(tgt_cls, ((0, n_pad), (0, 0)))
        aux = jnp.pad(aux, ((0, n_pad), (0, 0)))
    N_pad = N + n_pad
    G = N_pad // tile_n

    # Double-buffered pred+tgt tiles plus small streams, with headroom; capped
    # well under v7x's 64 MiB physical VMEM, above v5e's 16 MiB scoped default.
    tile_bytes = tile_n * bytes_pair
    vmem_limit = int(min(max(4 * tile_bytes + (8 << 20), 24 << 20), 56 << 20))

    kernel = functools.partial(_fused_loss_kernel, alpha=alpha, gamma=gamma,
                               inv_l=1.0 / float(L))

    parts = pl.pallas_call(
        kernel,
        out_shape=jax.ShapeDtypeStruct((G, 8, 128), jnp.float32),
        grid_spec=pltpu.PrefetchScalarGridSpec(
            num_scalar_prefetch=0,
            grid=(G,),
            in_specs=[pl.BlockSpec((tile_n, L), lambda i: (i, 0)),
                      pl.BlockSpec((tile_n, L), lambda i: (i, 0)),
                      pl.BlockSpec((tile_n, C1), lambda i: (i, 0)),
                      pl.BlockSpec((tile_n, 1), lambda i: (i, 0)),
                      pl.BlockSpec((tile_n, 2), lambda i: (i, 0)),
                      pl.BlockSpec((1, C1), lambda i: (0, 0))],
            out_specs=pl.BlockSpec((1, 8, 128), lambda i: (i, 0, 0))),
        compiler_params=pltpu.CompilerParams(
            dimension_semantics=("parallel",),
            vmem_limit_bytes=vmem_limit),
    )(pred_flat, tgt_flat, logits_flat, tgt_cls, aux, class_w)

    focal_total = jnp.sum(parts[:, 0, 0])
    dice_total = jnp.sum(parts[:, 0, 1])
    bce_total = jnp.sum(parts[:, 0, 2])

    loss_mask_pos = (focal_total + dice_total) / num_valid
    loss_bce_pos = bce_total / float(N * C1)        # real N, not padded

    # ---- weight_dict multiplication (what forward() does after fd_loss) ----
    weight_dict = {'loss_bce_pos': cfg['class_weight'],
                   'loss_mask_pos': cfg['mask_weight']}
    losses = {'loss_bce_pos': loss_bce_pos, 'loss_mask_pos': loss_mask_pos}
    return {k: v * weight_dict[k] for k, v in losses.items()}


# -----------------------------------------------------------------------------
if __name__ == "__main__":
    key = jax.random.PRNGKey(0)
    k1, k2, k3, k4 = jax.random.split(key, 4)

    # Small, module-consistent shapes: batch=2, num_queries=num_keypoints=8,
    # heatmap 16x16, num_classes = 8 (+1 no-object class).
    B, Q, H, W = 2, 8, 16, 16
    num_classes = Q
    C1 = num_classes + 1

    cfg = dict(class_weight=2.0, mask_weight=5.0, eos_coef=0.1,
               num_classes=num_classes, use_target_weight=True)

    pred_masks = jax.random.normal(k1, (B, Q, H, W), jnp.float32)
    pred_logits = jax.random.normal(k2, (B, Q, C1), jnp.float32)
    tgt_heatmaps = jax.nn.sigmoid(
        4.0 * jax.random.normal(k3, (B, Q, H, W), jnp.float32))
    visibility = (jax.random.uniform(k4, (B, Q)) > 0.3).astype(jnp.float32)
    target_weight = visibility[..., None]

    outputs = {'pred_logits': pred_logits, 'pred_masks': pred_masks}
    targets = {'heatmaps': tgt_heatmaps, 'visibility': visibility}

    losses = pos_focal_dice_loss_bce_cls_emb_forward(
        outputs, targets, target_weight, cfg)
    losses = jax.tree_util.tree_map(jax.block_until_ready, losses)

    # sanity: finite scalars
    for k, v in losses.items():
        assert v.shape == () and bool(jnp.isfinite(v)), (k, v)
    print("KERNEL_OK")
</pallas_src>

<mosaic_0001>
module attributes {stable_mosaic.version = 11 : i64} {
  func.func @_fused_loss_kernel(%arg0: i32, %arg1: memref<16x256xf32, #tpu.memory_space<vmem>>, %arg2: memref<16x256xf32, #tpu.memory_space<vmem>>, %arg3: memref<16x9xf32, #tpu.memory_space<vmem>>, %arg4: memref<16x1xi32, #tpu.memory_space<vmem>>, %arg5: memref<16x2xf32, #tpu.memory_space<vmem>>, %arg6: memref<1x9xf32, #tpu.memory_space<vmem>>, %arg7: memref<1x8x128xf32, #tpu.memory_space<vmem>>) attributes {dimension_semantics = [#tpu.dimension_semantics<parallel>], iteration_bounds = array<i64: 1>, scalar_prefetch = 0 : i64, scratch_operands = 0 : i64, tpu.core_type = #tpu.core_type<tc>, window_params = [{transform_indices = @transform_0, window_bounds = array<i64: 16, 256>}, {transform_indices = @transform_1, window_bounds = array<i64: 16, 256>}, {transform_indices = @transform_2, window_bounds = array<i64: 16, 9>}, {transform_indices = @transform_3, window_bounds = array<i64: 16, 1>}, {transform_indices = @transform_4, window_bounds = array<i64: 16, 2>}, {pipeline_mode = #tpu.pipeline_mode<synchronous>, transform_indices = @transform_5, window_bounds = array<i64: 1, 9>}, {transform_indices = @transform_6, window_bounds = array<i64: 1, 8, 128>}]} {
    %c0 = arith.constant 0 : index
    %c0_0 = arith.constant 0 : index
    %0 = vector.load %arg1[%c0, %c0_0] : memref<16x256xf32, #tpu.memory_space<vmem>>, vector<16x256xf32>
    %c0_1 = arith.constant 0 : index
    %c0_2 = arith.constant 0 : index
    %1 = vector.load %arg2[%c0_1, %c0_2] : memref<16x256xf32, #tpu.memory_space<vmem>>, vector<16x256xf32>
    %c0_3 = arith.constant 0 : index
    %c0_4 = arith.constant 0 : index
    %2 = vector.load %arg5[%c0_3, %c0_4] : memref<16x2xf32, #tpu.memory_space<vmem>>, vector<16x2xf32>
    %3 = vector.extract_strided_slice %2 {offsets = [0, 0], sizes = [16, 1], strides = [1, 1]} : vector<16x2xf32> to vector<16x1xf32>
    %4 = vector.extract_strided_slice %2 {offsets = [0, 1], sizes = [16, 1], strides = [1, 1]} : vector<16x2xf32> to vector<16x1xf32>
    %5 = math.absf %0 : vector<16x256xf32>
    %cst = arith.constant 0.000000e+00 : f32
    %6 = vector.broadcast %cst : f32 to vector<16x256xf32>
    %7 = arith.subf %6, %5 : vector<16x256xf32>
    %8 = math.exp %7 : vector<16x256xf32>
    %9 = math.log1p %8 : vector<16x256xf32>
    %cst_5 = arith.constant 0.000000e+00 : f32
    %10 = vector.broadcast %cst_5 : f32 to vector<16x256xf32>
    %11 = arith.maximumf %0, %10 : vector<16x256xf32>
    %12 = arith.mulf %0, %1 : vector<16x256xf32>
    %13 = arith.subf %11, %12 : vector<16x256xf32>
    %14 = arith.addf %13, %9 : vector<16x256xf32>
    %cst_6 = arith.constant 1.000000e+00 : f32
    %15 = vector.broadcast %cst_6 : f32 to vector<16x256xf32>
    %16 = arith.addf %15, %8 : vector<16x256xf32>
    %cst_7 = arith.constant 1.000000e+00 : f32
    %17 = vector.broadcast %cst_7 : f32 to vector<16x256xf32>
    %18 = arith.divf %17, %16 : vector<16x256xf32>
    %cst_8 = arith.constant 0.000000e+00 : f32
    %19 = vector.broadcast %cst_8 : f32 to vector<16x256xf32>
    %20 = arith.cmpf oge, %0, %19 : vector<16x256xf32>
    %21 = arith.mulf %8, %18 : vector<16x256xf32>
    %22 = arith.select %20, %18, %21 : vector<16x256xi1>, vector<16x256xf32>
    %23 = arith.mulf %22, %1 : vector<16x256xf32>
    %cst_9 = arith.constant 1.000000e+00 : f32
    %24 = vector.broadcast %cst_9 : f32 to vector<16x256xf32>
    %25 = arith.subf %24, %22 : vector<16x256xf32>
    %cst_10 = arith.constant 1.000000e+00 : f32
    %26 = vector.broadcast %cst_10 : f32 to vector<16x256xf32>
    %27 = arith.subf %26, %1 : vector<16x256xf32>
    %28 = arith.mulf %25, %27 : vector<16x256xf32>
    %29 = arith.addf %23, %28 : vector<16x256xf32>
    %cst_11 = arith.constant 1.000000e+00 : f32
    %30 = vector.broadcast %cst_11 : f32 to vector<16x256xf32>
    %31 = arith.subf %30, %29 : vector<16x256xf32>
    %32 = arith.mulf %31, %31 : vector<16x256xf32>
    %cst_12 = arith.constant 2.500000e-01 : f32
    %33 = vector.broadcast %cst_12 : f32 to vector<16x256xf32>
    %34 = arith.mulf %33, %1 : vector<16x256xf32>
    %cst_13 = arith.constant 1.000000e+00 : f32
    %35 = vector.broadcast %cst_13 : f32 to vector<16x256xf32>
    %36 = arith.subf %35, %1 : vector<16x256xf32>
    %cst_14 = arith.constant 7.500000e-01 : f32
    %37 = vector.broadcast %cst_14 : f32 to vector<16x256xf32>
    %38 = arith.mulf %37, %36 : vector<16x256xf32>
    %39 = arith.addf %34, %38 : vector<16x256xf32>
    %40 = arith.mulf %39, %32 : vector<16x256xf32>
    %41 = arith.mulf %40, %14 : vector<16x256xf32>
    %cst_15 = arith.constant dense<0.000000e+00> : vector<16xf32>
    %42 = vector.multi_reduction <add>, %41, %cst_15 [1] : vector<16x256xf32> to vector<16xf32>
    %43 = vector.shape_cast %42 : vector<16xf32> to vector<16x1xf32>
    %cst_16 = arith.constant 3.906250e-03 : f32
    %44 = vector.broadcast %cst_16 : f32 to vector<16x1xf32>
    %45 = arith.mulf %43, %44 : vector<16x1xf32>
    %46 = arith.mulf %22, %1 : vector<16x256xf32>
    %cst_17 = arith.constant dense<0.000000e+00> : vector<16xf32>
    %47 = vector.multi_reduction <add>, %46, %cst_17 [1] : vector<16x256xf32> to vector<16xf32>
    %48 = vector.shape_cast %47 : vector<16xf32> to vector<16x1xf32>
    %49 = arith.addf %22, %1 : vector<16x256xf32>
    %cst_18 = arith.constant dense<0.000000e+00> : vector<16xf32>
    %50 = vector.multi_reduction <add>, %49, %cst_18 [1] : vector<16x256xf32> to vector<16xf32>
    %51 = vector.shape_cast %50 : vector<16xf32> to vector<16x1xf32>
    %cst_19 = arith.constant 2.000000e+00 : f32
    %52 = vector.broadcast %cst_19 : f32 to vector<16x1xf32>
    %53 = arith.mulf %52, %48 : vector<16x1xf32>
    %cst_20 = arith.constant 1.000000e+00 : f32
    %54 = vector.broadcast %cst_20 : f32 to vector<16x1xf32>
    %55 = arith.addf %53, %54 : vector<16x1xf32>
    %cst_21 = arith.constant 1.000000e+00 : f32
    %56 = vector.broadcast %cst_21 : f32 to vector<16x1xf32>
    %57 = arith.addf %51, %56 : vector<16x1xf32>
    %58 = arith.divf %55, %57 : vector<16x1xf32>
    %cst_22 = arith.constant 1.000000e+00 : f32
    %59 = vector.broadcast %cst_22 : f32 to vector<16x1xf32>
    %60 = arith.subf %59, %58 : vector<16x1xf32>
    %61 = arith.mulf %45, %3 : vector<16x1xf32>
    %62 = vector.shape_cast %61 : vector<16x1xf32> to vector<1x16x1xf32>
    %cst_23 = arith.constant dense<0.000000e+00> : vector<1xf32>
    %63 = vector.multi_reduction <add>, %62, %cst_23 [1, 2] : vector<1x16x1xf32> to vector<1xf32>
    %64 = vector.shape_cast %63 : vector<1xf32> to vector<1x1x1xf32>
    %65 = vector.extract %64[0, 0, 0] : f32 from vector<1x1x1xf32>
    %66 = vector.broadcast %65 : f32 to vector<1x1xf32>
    %67 = arith.mulf %60, %3 : vector<16x1xf32>
    %68 = vector.shape_cast %67 : vector<16x1xf32> to vector<1x16x1xf32>
    %cst_24 = arith.constant dense<0.000000e+00> : vector<1xf32>
    %69 = vector.multi_reduction <add>, %68, %cst_24 [1, 2] : vector<1x16x1xf32> to vector<1xf32>
    %70 = vector.shape_cast %69 : vector<1xf32> to vector<1x1x1xf32>
    %71 = vector.extract %70[0, 0, 0] : f32 from vector<1x1x1xf32>
    %72 = vector.broadcast %71 : f32 to vector<1x1xf32>
    %c0_25 = arith.constant 0 : index
    %c0_26 = arith.constant 0 : index
    %73 = vector.load %arg3[%c0_25, %c0_26] : memref<16x9xf32, #tpu.memory_space<vmem>>, vector<16x9xf32>
    %c0_27 = arith.constant 0 : index
    %c0_28 = arith.constant 0 : index
    %74 = vector.load %arg4[%c0_27, %c0_28] : memref<16x1xi32, #tpu.memory_space<vmem>>, vector<16x1xi32>
    %75 = tpu.iota {dimensions = array<i32: 1>} : vector<16x9xi32>
    %76 = vector.broadcast %74 : vector<16x1xi32> to vector<16x9xi32>
    %77 = arith.cmpi eq, %75, %76 : vector<16x9xi32>
    %78 = arith.extui %77 : vector<16x9xi1> to vector<16x9xi32>
    %79 = arith.sitofp %78 : vector<16x9xi32> to vector<16x9xf32>
    %cst_29 = arith.constant 0.000000e+00 : f32
    %80 = vector.broadcast %cst_29 : f32 to vector<16x9xf32>
    %81 = arith.maximumf %73, %80 : vector<16x9xf32>
    %82 = arith.mulf %73, %79 : vector<16x9xf32>
    %83 = arith.subf %81, %82 : vector<16x9xf32>
    %84 = math.absf %73 : vector<16x9xf32>
    %cst_30 = arith.constant 0.000000e+00 : f32
    %85 = vector.broadcast %cst_30 : f32 to vector<16x9xf32>
    %86 = arith.subf %85, %84 : vector<16x9xf32>
    %87 = math.exp %86 : vector<16x9xf32>
    %88 = math.log1p %87 : vector<16x9xf32>
    %89 = arith.addf %83, %88 : vector<16x9xf32>
    %c0_31 = arith.constant 0 : index
    %c0_32 = arith.constant 0 : index
    %90 = vector.load %arg6[%c0_31, %c0_32] : memref<1x9xf32, #tpu.memory_space<vmem>>, vector<1x9xf32>
    %91 = vector.broadcast %90 : vector<1x9xf32> to vector<16x9xf32>
    %92 = arith.mulf %89, %91 : vector<16x9xf32>
    %93 = vector.broadcast %4 : vector<16x1xf32> to vector<16x9xf32>
    %94 = arith.mulf %92, %93 : vector<16x9xf32>
    %95 = vector.shape_cast %94 : vector<16x9xf32> to vector<1x16x9xf32>
    %cst_33 = arith.constant dense<0.000000e+00> : vector<1xf32>
    %96 = vector.multi_reduction <add>, %95, %cst_33 [1, 2] : vector<1x16x9xf32> to vector<1xf32>
    %97 = vector.shape_cast %96 : vector<1xf32> to vector<1x1x1xf32>
    %98 = vector.extract %97[0, 0, 0] : f32 from vector<1x1x1xf32>
    %99 = vector.broadcast %98 : f32 to vector<1x1xf32>
    %100 = tpu.iota {dimensions = array<i32: 1>} : vector<8x128xi32>
    %c0_i32 = arith.constant 0 : i32
    %101 = vector.broadcast %c0_i32 : i32 to vector<8x128xi32>
    %102 = arith.cmpi eq, %100, %101 : vector<8x128xi32>
    %cst_34 = arith.constant 0.000000e+00 : f32
    %103 = vector.shape_cast %66 : vector<1x1xf32> to vector<1x1xf32>
    %104 = vector.broadcast %103 : vector<1x1xf32> to vector<8x128xf32>
    %105 = vector.broadcast %cst_34 : f32 to vector<8x128xf32>
    %106 = arith.select %102, %104, %105 : vector<8x128xi1>, vector<8x128xf32>
    %c1_i32 = arith.constant 1 : i32
    %107 = vector.broadcast %c1_i32 : i32 to vector<8x128xi32>
    %108 = arith.cmpi eq, %100, %107 : vector<8x128xi32>
    %cst_35 = arith.constant 0.000000e+00 : f32
    %109 = vector.shape_cast %72 : vector<1x1xf32> to vector<1x1xf32>
    %110 = vector.broadcast %109 : vector<1x1xf32> to vector<8x128xf32>
    %111 = vector.broadcast %cst_35 : f32 to vector<8x128xf32>
    %112 = arith.select %108, %110, %111 : vector<8x128xi1>, vector<8x128xf32>
    %113 = arith.addf %106, %112 : vector<8x128xf32>
    %c2_i32 = arith.constant 2 : i32
    %114 = vector.broadcast %c2_i32 : i32 to vector<8x128xi32>
    %115 = arith.cmpi eq, %100, %114 : vector<8x128xi32>
    %cst_36 = arith.constant 0.000000e+00 : f32
    %116 = vector.shape_cast %99 : vector<1x1xf32> to vector<1x1xf32>
    %117 = vector.broadcast %116 : vector<1x1xf32> to vector<8x128xf32>
    %118 = vector.broadcast %cst_36 : f32 to vector<8x128xf32>
    %119 = arith.select %115, %117, %118 : vector<8x128xi1>, vector<8x128xf32>
    %120 = arith.addf %113, %119 : vector<8x128xf32>
    %121 = vector.shape_cast %120 : vector<8x128xf32> to vector<1x8x128xf32>
    %c0_37 = arith.constant 0 : index
    %c0_38 = arith.constant 0 : index
    %c0_39 = arith.constant 0 : index
    %122 = vector.load %arg7[%c0_37, %c0_38, %c0_39] : memref<1x8x128xf32, #tpu.memory_space<vmem>>, vector<1x8x128xf32>
    tpu.vector_store %arg7[%c0_37, %c0_38, %c0_39], %121 {strides = array<i32>} : memref<1x8x128xf32, #tpu.memory_space<vmem>>, vector<1x8x128xf32>,
    return
  }
  func.func @transform_0(%arg0: i32) -> (i32, i32) {
    %c0_i32 = arith.constant 0 : i32
    %c0_i32_0 = arith.constant 0 : i32
    return %arg0, %c0_i32 : i32, i32
  }
  func.func @transform_1(%arg0: i32) -> (i32, i32) {
    %c0_i32 = arith.constant 0 : i32
    %c0_i32_0 = arith.constant 0 : i32
    return %arg0, %c0_i32 : i32, i32
  }
  func.func @transform_2(%arg0: i32) -> (i32, i32) {
    %c0_i32 = arith.constant 0 : i32
    %c0_i32_0 = arith.constant 0 : i32
    return %arg0, %c0_i32 : i32, i32
  }
  func.func @transform_3(%arg0: i32) -> (i32, i32) {
    %c0_i32 = arith.constant 0 : i32
    %c0_i32_0 = arith.constant 0 : i32
    return %arg0, %c0_i32 : i32, i32
  }
  func.func @transform_4(%arg0: i32) -> (i32, i32) {
    %c0_i32 = arith.constant 0 : i32
    %c0_i32_0 = arith.constant 0 : i32
    return %arg0, %c0_i32 : i32, i32
  }
  func.func @transform_5(%arg0: i32) -> (i32, i32) {
    %c0_i32 = arith.constant 0 : i32
    %c0_i32_0 = arith.constant 0 : i32
    %c0_i32_1 = arith.constant 0 : i32
    return %c0_i32, %c0_i32_0 : i32, i32
  }
  func.func @transform_6(%arg0: i32) -> (i32, i32, i32) {
    %c0_i32 = arith.constant 0 : i32
    %c0_i32_0 = arith.constant 0 : i32
    %c0_i32_1 = arith.constant 0 : i32
    return %arg0, %c0_i32, %c0_i32_0 : i32, i32, i32
  }
}

</mosaic_0001>

<bundles_post_ra>
// kernel: tpu_custom_call.1
= control target key start
LH: loop header
LB: loop body
LE: loop exit
PB: predicated region body
PF: predicated region fallthrough
CT: control target
= control target key end

     0   :  { %11 = vsyncpa [#allocation3], 0  ;;  %s984_s0 = inlined_call_operand.vmem [shape: f32[16,256], index: 0, kind: input, shape index: {}]   ;;  %s985_s1 = inlined_call_operand.hbm [shape: f32[16,256], index: 1, kind: input, shape index: {}]   ;;  %s986_s2 = inlined_call_operand.hbm [shape: f32[16,9], index: 2, kind: input, shape index: {}]   ;;  %s987_s3 = inlined_call_operand.vmem [shape: s32[16,1], index: 3, kind: input, shape index: {}]   ;;  %s988_s4 = inlined_call_operand.vmem [shape: f32[16,2], index: 4, kind: input, shape index: {}]   ;;  %s989_s5 = inlined_call_operand.vmem [shape: f32[1,9], index: 5, kind: input, shape index: {}]   ;;  %s990_s6 = inlined_call_operand.hbm [shape: f32[1,8,128], index: 6, kind: output, shape index: {}]  }
   0x1   :  { %12 = vsyncpa [#allocation6], 0 }
   0x2   :  { %13 = vsyncpa [#allocation4], 0  ;;  %s20_s23 = sshll.u32 %s985_s1, 4  ;;  %s598_s24 = smov [#allocation2]   ;;  %s21_s23 = int_to_ptr.hbm [resolvable:$true] %s20_s23 }
   0x3   :  { %s22_s25 = sshll.u32 %s598_s24, 4  ;;  %s33_s28 = sshll.u32 %s986_s2, 4  ;;  %s23_s25 = int_to_ptr.vmem [resolvable:$true] %s22_s25  ;;  %s34_s28 = int_to_ptr.hbm [resolvable:$true] %s33_s28 }
   0x4   :  { %s599_s29 = smov 256   ;;  %s600_s30 = smov 16  }
   0x5   :  { %28 = dma.hbm_to_vmem [thread:$0]  %s21_s23, 512, %s23_s25, [#allocation3], %s599_s29, %s599_s29, %s600_s30  }
   0x6   :  { %s601_s7 = smov [#allocation5]   ;;  %s602_s9 = smov 128  }
   0x7   :  { %s35_s8 = sshll.u32 %s601_s7, 4  ;;  %s603_s10 = smov 8   ;;  %s36_s8 = int_to_ptr.vmem [resolvable:$true] %s35_s8 }
   0x8   :  { %41 = dma.hbm_to_vmem [thread:$0]  %s34_s28, 256, %s36_s8, [#allocation6], %s602_s9, %s602_s9, %s603_s10  }
   0x9   :  { %592 = dma.done.wait [#allocation3], 512  }
   0xa   :  { %593 = vsyncadd [#allocation3], 4294966784 }
   0xb   :  { %594 = dma.done.wait [#allocation6], 256  }
   0xc   :  { %595 = vsyncadd [#allocation6], 4294967040  ;;  %v652_v0 = vld [vmem:[%s984_s0] sm:$0xff]  ;;  %v657_v1 = vld [vmem:[%s984_s0 + $0x8] sm:$0xff]  ;;  %s607_s25 = smov [#allocation7]   ;;  %s451_s30 = sshll.u32 %s990_s6, 4  ;;  %s452_s30 = int_to_ptr.hbm [resolvable:$true] %s451_s30 }
   0xd   :  { %v66_v2 = vand.u32 2147483647, %v652_v0  ;;  %v67_v3 = vand.u32 2147483647, %v657_v1  ;;  %v664_v4 = vld [vmem:[%s984_s0 + $0x10] sm:$0xff]  ;;  %v669_v5 = vld [vmem:[%s984_s0 + $0x18] sm:$0xff] }
   0xe   :  { %v68_v8 = vand.u32 2147483647, %v664_v4  ;;  %v69_v9 = vand.u32 2147483647, %v669_v5  ;;  %v680_v19 = vld [vmem:[#allocation2 + $0x10] sm:$0xff]  ;;  %v684_v21 = vld [vmem:[#allocation2] sm:$0xff] }
   0xf   :  { %v70_v6 = vsub.f32 0.0, %v66_v2  ;;  %v71_v7 = vsub.f32 0.0, %v67_v3  ;;  %v686_v22 = vld [vmem:[#allocation2 + $0x8] sm:$0xff]  ;;  %v691_v24 = vld [vmem:[#allocation2 + $0x18] sm:$0xff]  ;;  %v218_v27 = vsub.f32 1.0, %v684_v21  ;;  %v220_v31 = vsub.f32 1.0, %v680_v19 }
  0x10   :  { %v72_v12 = vsub.f32 0.0, %v68_v8  ;;  %v73_v13 = vsub.f32 0.0, %v69_v9  ;;  %v219_v28 = vsub.f32 1.0, %v686_v22  ;;  %v221_v35 = vsub.f32 1.0, %v691_v24  ;;  %s449_s26 = sshll.u32 %s607_s25, 4  ;;  %s450_s26 = int_to_ptr.vmem [resolvable:$true] %s449_s26 }
  0x11   :  { %v74_v10 = vmul.f32 1.442695, %v70_v6  ;;  %v76_v11 = vmul.f32 1.442695, %v71_v7  ;;  %vm198_vm7 = vcmp.ge.f32.partialorder %v652_v0, 0.0  ;;  %v120_v62 = vmax.f32 %v664_v4, 0.0 }
  0x12   :  { %v78_v14 = vmul.f32 1.442695, %v72_v12  ;;  %v80_v15 = vmul.f32 1.442695, %v73_v13  ;;  %v121_v63 = vmax.f32 %v669_v5, 0.0  ;;  %v124_v2 = vmul.f32 %v680_v19, %v664_v4 }
  0x13   :  { %484 = vpow2.f32 %v74_v10 }
  0x14   :  { %486 = vpow2.f32 %v76_v11 }
  0x15   :  { %488 = vpow2.f32 %v78_v14 }
  0x16   :  { %490 = vpow2.f32 %v80_v15 }
  0x19   :  { %v673_v16 = vpop.eup %484 }
  0x1a   :  { %v675_v17 = vpop.eup %486  ;;  %v678_v18 = vadd.f32 1.0, %v673_v16  ;;  %v715_v37 = vmul.f32 -0.5, %v673_v16 }
  0x1b   :  { %v682_v20 = vpop.eup %488  ;;  %v689_v23 = vadd.f32 1.0, %v675_v17 }
  0x1c   :  { %v693_v25 = vpop.eup %490  ;;  %492 = vrcp.f32 %v678_v18  ;;  %v149_v26 = vand.u32 2147483648, %v678_v18  ;;  %v147_v29 = vand.u32 2147483647, %v678_v18  ;;  %v705_v33 = vadd.f32 1.0, %v682_v20 }
  0x1d   :  { %494 = vrcp.f32 %v689_v23  ;;  %v164_v30 = vand.u32 2147483648, %v689_v23  ;;  %v162_v32 = vand.u32 2147483647, %v689_v23  ;;  %v708_v34 = vadd.f32 1.0, %v693_v25 }
  0x1e   :  { %vm143_vm0 = vweird.f32 %v678_v18  ;;  %vm158_vm1 = vweird.f32 %v689_v23  ;;  %v103_v36 = vmul.f32 -0.5, %v682_v20  ;;  %v717_v38 = vor.u32 1.1754944e-38, %v149_v26 }
  0x1f   :  { %496 = vrcp.f32 %v705_v33  ;;  %v179_v39 = vand.u32 2147483648, %v705_v33  ;;  %v106_v40 = vand.u32 2147483647, %v682_v20  ;;  %vm722_vm2 = vcmp.eq.f32.partialorder %v147_v29, 8.507059e+37 }
  0x20   :  { %v726_v42 = vor.u32 1.1754944e-38, %v164_v30  ;;  %vm173_vm3 = vweird.f32 %v705_v33  ;;  %498 = vrcp.f32 %v708_v34  ;;  %v194_v43 = vand.u32 2147483648, %v708_v34 }
  0x21   :  { %vm731_vm4 = vcmp.eq.f32.partialorder %v162_v32, 8.507059e+37  ;;  %v177_v46 = vand.u32 2147483647, %v705_v33  ;;  %v192_v47 = vand.u32 2147483647, %v708_v34  ;;  %500 = vlog2.f32 %v705_v33 }
  0x22   :  { %v493_v44 = vpop.eup %492  ;;  %v104_v48 = vadd.f32 1.0, %v103_v36  ;;  %v739_v51 = vor.u32 1.1754944e-38, %v179_v39  ;;  %v741_v52 = vor.u32 1.1754944e-38, %v194_v43  ;;  %vm188_vm8 = vweird.f32 %v708_v34 }
  0x23   :  { %v495_v49 = vpop.eup %494  ;;  %v139_v50 = vmul.f32 %v493_v44, %v678_v18  ;;  %vm144_vm5 = vweird.f32 %v493_v44  ;;  %vm747_vm9 = vcmp.lt.f32.partialorder %v106_v40, 0.0004427343  ;;  %502 = vlog2.f32 %v708_v34 }
  0x24   :  { %v154_v53 = vmul.f32 %v495_v49, %v689_v23  ;;  %vm159_vm6 = vweird.f32 %v495_v49  ;;  %v105_v54 = vmul.f32 %v682_v20, %v104_v48  ;;  %v112_v57 = vmul.f32 -0.5, %v693_v25  ;;  %vm769_vm13 = vmor %vm143_vm0, %vm144_vm5 }
  0x25   :  { %v140_v56 = vsub.f32 1.0, %v139_v50  ;;  %v115_v58 = vand.u32 2147483647, %v693_v25  ;;  %v497_v59 = vpop.eup %496  ;;  %vm755_vm11 = vcmp.eq.f32.partialorder %v177_v46, 8.507059e+37  ;;  %vm776_vm15 = vcmp.eq.f32.partialorder %v192_v47, 8.507059e+37  ;;  %vm787_vm0 = vmor %vm158_vm1, %vm159_vm6 }
  0x26   :  { %v155_v60 = vsub.f32 1.0, %v154_v53  ;;  %v763_v3 = vpop.eup %498  ;;  %v169_v7 = vmul.f32 %v497_v59, %v705_v33  ;;  %vm174_vm12 = vweird.f32 %v497_v59  ;;  %v113_v8 = vadd.f32 1.0, %v112_v57 }
  0x27   :  { %v141_v6 = vmul.f32 %v493_v44, %v140_v56  ;;  %v501_v9 = vpop.eup %500  ;;  %v184_v12 = vmul.f32 %v763_v3, %v708_v34  ;;  %vm189_vm14 = vweird.f32 %v763_v3  ;;  %vm780_vm10 = vcmp.lt.f32.partialorder %v115_v58, 0.0004427343  ;;  %vm809_vm6 = vmor %vm173_vm3, %vm174_vm12 }
  0x28   :  { %v156_v11 = vmul.f32 %v495_v49, %v155_v60  ;;  %v170_v29 = vsub.f32 1.0, %v169_v7  ;;  %vm200_vm5 = vcmp.ge.f32.partialorder %v664_v4, 0.0  ;;  %v102_v30 = vmul.f32 0.6931472, %v501_v9 }
  0x29   :  { %v142_v15 = vadd.f32 %v493_v44, %v141_v6  ;;  %v114_v32 = vmul.f32 %v693_v25, %v113_v8  ;;  %v185_v39 = vsub.f32 1.0, %v184_v12  ;;  %v125_v40 = vmul.f32 %v691_v24, %v669_v5  ;;  %v503_v46 = vpop.eup %502 }
  0x2a   :  { %v157_v36 = vadd.f32 %v495_v49, %v156_v11  ;;  %v128_v43 = vsub.f32 %v120_v62, %v124_v2  ;;  %v171_v48 = vmul.f32 %v497_v59, %v170_v29  ;;  %vm201_vm1 = vcmp.ge.f32.partialorder %v669_v5, 0.0 }
  0x2b   :  { %v146_v47 = vsel %vm769_vm13, %v493_v44, %v142_v15  ;;  %v108_v50 = vsel %vm747_vm9, %v105_v54, %v102_v30  ;;  %v240_v53 = vmul.f32 0.25, %v680_v19  ;;  %v186_v58 = vmul.f32 %v763_v3, %v185_v39 }
  0x2c   :  { %v151_v56 = vsel %vm722_vm2, %v717_v38, %v146_v47  ;;  %v161_v57 = vsel %vm787_vm0, %v495_v49, %v157_v36  ;;  %v111_v55 = vmul.f32 0.6931472, %v503_v46  ;;  %v172_v38 = vadd.f32 %v497_v59, %v171_v48  ;;  %vm832_vm2 = vmor %vm188_vm8, %vm189_vm14 }
  0x2d   :  { %v166_v54 = vsel %vm731_vm4, %v726_v42, %v161_v57  ;;  %v202_v41 = vmul.f32 %v673_v16, %v151_v56  ;;  %v129_v60 = vsub.f32 %v121_v63, %v125_v40  ;;  %v187_v62 = vadd.f32 %v763_v3, %v186_v58 }
  0x2e   :  { %v203_v49 = vmul.f32 %v675_v17, %v166_v54  ;;  %v117_v33 = vsel %vm780_vm10, %v114_v32, %v111_v55  ;;  %v822_v2 = vadd.f32 %v128_v43, %v108_v50  ;;  %v176_v45 = vsel %vm809_vm6, %v497_v59, %v172_v38 }
  0x2f   :  { %v206_v6 = vsel %vm198_vm7, %v151_v56, %v202_v41  ;;  %v836_v63 = vadd.f32 %v129_v60, %v117_v33  ;;  %v241_v7 = vmul.f32 0.25, %v691_v24  ;;  %vm1011_vm3 = vcmp.ge.f32.partialorder %v657_v1, 0.0 }
  0x30   :  { %v207_v8 = vsel %vm1011_vm3, %v166_v54, %v203_v49  ;;  %v272_v9 = vadd.f32 %v206_v6, %v684_v21  ;;  %v214_v10 = vsub.f32 1.0, %v206_v6  ;;  %v210_v59 = vmul.f32 %v206_v6, %v684_v21 }
  0x31   :  { %v215_v11 = vsub.f32 1.0, %v207_v8  ;;  %v273_v12 = vadd.f32 %v207_v8, %v686_v22  ;;  %v211_v34 = vmul.f32 %v207_v8, %v686_v22  ;;  %v181_v14 = vsel %vm755_vm11, %v739_v51, %v176_v45 }
  0x32   :  { %v222_v15 = vmul.f32 %v218_v27, %v214_v10  ;;  %v191_v26 = vsel %vm832_vm2, %v763_v3, %v187_v62  ;;  %v204_v29 = vmul.f32 %v682_v20, %v181_v14  ;;  %v244_v30 = vmul.f32 0.75, %v220_v31 }
  0x33   :  { %v276_v32 = vadd.f32 %v273_v12, %v272_v9  ;;  %v223_v36 = vmul.f32 %v219_v28, %v215_v11  ;;  %v266_v39 = vadd.f32 %v211_v34, %v210_v59  ;;  %v196_v51 = vsel %vm776_vm15, %v741_v52, %v191_v26 }
  0x34   :  { %v226_v61 = vadd.f32 %v222_v15, %v210_v59  ;;  %v205_v40 = vmul.f32 %v693_v25, %v196_v51  ;;  %v208_v3 = vsel %vm200_vm5, %v181_v14, %v204_v29  ;;  %v245_v20 = vmul.f32 0.75, %v221_v35  ;;  %v351_v14 = vld [vmem:[%s987_s3] sm:$0xff] }
  0x35   :  { %277 = vadd.xlane.f32.xlu0 %v276_v32  ;;  %v227_v43 = vadd.f32 %v223_v36, %v211_v34  ;;  %267 = vadd.xlane.f32.xlu1 %v266_v39  ;;  %v216_v46 = vsub.f32 1.0, %v208_v3  ;;  %v274_v47 = vadd.f32 %v208_v3, %v680_v19  ;;  %v212_v48 = vmul.f32 %v208_v3, %v680_v19 }
  0x36   :  { %v230_v50 = vsub.f32 1.0, %v226_v61  ;;  %v209_v52 = vsel %vm201_vm1, %v196_v51, %v205_v40  ;;  %v248_v13 = vadd.f32 %v244_v30, %v240_v53  ;;  %v249_v25 = vadd.f32 %v245_v20, %v241_v7 }
  0x37   :  { %v231_v56 = vsub.f32 1.0, %v227_v43  ;;  %v217_v4 = vsub.f32 1.0, %v209_v52  ;;  %v275_v57 = vadd.f32 %v209_v52, %v691_v24  ;;  %v213_v44 = vmul.f32 %v209_v52, %v691_v24  ;;  %v928_v52 = vld [vmem:[#allocation5] sm:$0xff] }
  0x38   :  { %v234_v58 = vmul.f32 %v230_v50, %v230_v50  ;;  %v224_v55 = vmul.f32 %v220_v31, %v216_v46  ;;  %504 = vlog2.f32 %v678_v18  ;;  %v86_v54 = vadd.f32 1.0, %v715_v37  ;;  %v925_v50 = vld [vmem:[%s988_s4 + $0x8] sm:$0xff] }
  0x39   :  { %v235_v41 = vmul.f32 %v231_v56, %v231_v56  ;;  %v279_v38 = vadd.f32 %v275_v57, %v274_v47  ;;  %v225_v5 = vmul.f32 %v221_v35, %v217_v4  ;;  %v269_v53 = vadd.f32 %v213_v44, %v212_v48 }
  0x3a   :  { %v228_v60 = vadd.f32 %v224_v55, %v212_v48  ;;  %v87_v49 = vmul.f32 %v673_v16, %v86_v54  ;;  %v88_v62 = vand.u32 2147483647, %v673_v16  ;;  %506 = vlog2.f32 %v689_v23 }
  0x3b   :  { %v229_v33 = vadd.f32 %v225_v5, %v213_v44  ;;  %v94_v19 = vmul.f32 -0.5, %v675_v17  ;;  %v97_v18 = vand.u32 2147483647, %v675_v17  ;;  %v118_v31 = vmax.f32 %v652_v0, 0.0 }
  0x3c   :  { %v232_v37 = vsub.f32 1.0, %v228_v60  ;;  %vm884_vm4 = vcmp.lt.f32.partialorder %v88_v62, 0.0004427343  ;;  %v119_v24 = vmax.f32 %v657_v1, 0.0  ;;  %v122_v35 = vmul.f32 %v684_v21, %v652_v0 }
  0x3d   :  { %280 = vadd.xlane.f32.xlu0 %v279_v38  ;;  %v233_v16 = vsub.f32 1.0, %v229_v33  ;;  %270 = vadd.xlane.f32.xlu1 %v269_v53  ;;  %v95_v23 = vadd.f32 1.0, %v94_v19  ;;  %vm891_vm7 = vcmp.lt.f32.partialorder %v97_v18, 0.0004427343  ;;  %v123_v42 = vmul.f32 %v686_v22, %v657_v1 }
  0x3e   :  { %v505_v7 = vpop.eup %504  ;;  %v236_v8 = vmul.f32 %v232_v37, %v232_v37  ;;  %v126_v9 = vsub.f32 %v118_v31, %v122_v35  ;;  %v238_v10 = vmul.f32 0.25, %v684_v21  ;;  %v239_v59 = vmul.f32 0.25, %v686_v22 }
  0x3f   :  { %v237_v11 = vmul.f32 %v233_v16, %v233_v16  ;;  %v84_v0 = vmul.f32 0.6931472, %v505_v7  ;;  %v96_v12 = vmul.f32 %v675_v17, %v95_v23  ;;  %v127_v34 = vsub.f32 %v119_v24, %v123_v42 }
  0x40   :  { %v507_v15 = vpop.eup %506  ;;  %v252_v26 = vmul.f32 %v248_v13, %v236_v8  ;;  %v242_v1 = vmul.f32 0.75, %v218_v27  ;;  %v243_v29 = vmul.f32 0.75, %v219_v28  ;;  %v604_v39 = vmov 0   ;;  %v930_v13 = vld [vmem:[#allocation5 + $0x8] sm:$0xff] }
  0x41   :  { %v253_v30 = vmul.f32 %v249_v25, %v237_v11  ;;  %v90_v32 = vsel %vm884_vm4, %v87_v49, %v84_v0  ;;  %v93_v36 = vmul.f32 0.6931472, %v507_v15  ;;  %480 = vset.pattern.permute.xlu2 %v604_v39  ;;  %v605_v22 = vmov 1  }
  0x42   :  { %v256_v17 = vmul.f32 %v252_v26, %v822_v2  ;;  %v130_v51 = vadd.f32 %v126_v9, %v90_v32  ;;  %v246_v61 = vadd.f32 %v242_v1, %v238_v10  ;;  %v247_v40 = vadd.f32 %v243_v29, %v239_v59  ;;  %356 = vperm.xlu2 %480, %v351_v14   ;;  %v352_v2 = vld [vmem:[%s987_s3 + $0x8] sm:$0xff] }
  0x43   :  { %v257_v3 = vmul.f32 %v253_v30, %v836_v63  ;;  %v99_v21 = vsel %vm891_vm7, %v96_v12, %v93_v36  ;;  %482 = vset.pattern.permute.xlu0 %v605_v22  ;;  %v919_v63 = vld [vmem:[%s988_s4] sm:$0xff]  ;;  %v373_v25 = vand.u32 2147483647, %v928_v52  ;;  %v374_v56 = vand.u32 2147483647, %v930_v13 }
  0x44   :  { %v131_v27 = vadd.f32 %v127_v34, %v99_v21  ;;  %v250_v28 = vmul.f32 %v246_v61, %v234_v58  ;;  %v251_v20 = vmul.f32 %v247_v40, %v235_v41  ;;  %v353_v38 = vlaneseq }
  0x45   :  { %v261_v43 = vadd.f32 %v257_v3, %v256_v17  ;;  %v375_v4 = vsub.f32 0.0, %v373_v25  ;;  %v376_v57 = vsub.f32 0.0, %v374_v56  ;;  %v606_v9 = vmov 0.0  }
  0x46   :  { %v254_v46 = vmul.f32 %v250_v28, %v130_v51  ;;  %v255_v47 = vmul.f32 %v251_v20, %v131_v27  ;;  %v940_v18 = vand.u32 127, %v353_v38  ;;  %v367_v26 = vmax.f32 %v928_v52, 0.0 }
  0x47   :  { %262 = vadd.xlane.f32.xlu1 %v261_v43  ;;  %v377_v44 = vmul.f32 1.442695, %v375_v4  ;;  %v379_v58 = vmul.f32 1.442695, %v376_v57  ;;  %vm322_vm13 = vcmask 7168   ;;  %vm419_vm3 = vcmask 72704  }
  0x48   :  { %v258_v48 = vadd.f32 %v255_v47, %v254_v46  ;;  %v368_v47 = vmax.f32 %v930_v13, 0.0  ;;  %vm435_vm4 = vcmp.eq.s32.totalorder %v940_v18, 1  ;;  %vm432_vm7 = vcmp.eq.s32.totalorder %v940_v18, 0 }
  0x49   :  { %508 = vpow2.f32 %v377_v44 }
  0x4a   :  { %259 = vadd.xlane.f32.xlu0 %v258_v48  ;;  %359 = vperm.xlu2 %480, %v352_v2   ;;  %510 = vpow2.f32 %v379_v58 }
  0x4f   :  { %v934_v5 = vpop.eup %508 }
  0x50   :  { %v936_v60 = vpop.eup %510  ;;  %v381_v37 = vadd.f32 1.0, %v934_v5  ;;  %v384_v24 = vmul.f32 -0.5, %v934_v5  ;;  %v387_v51 = vand.u32 2147483647, %v934_v5 }
  0x51   :  { %v390_v35 = vadd.f32 1.0, %v936_v60  ;;  %v393_v23 = vmul.f32 -0.5, %v936_v60  ;;  %v396_v58 = vand.u32 2147483647, %v936_v60 }
  0x52   :  { %481 = vset.pattern.permute.xlu2 %v605_v22  ;;  %v385_v12 = vadd.f32 1.0, %v384_v24  ;;  %vm961_vm1 = vcmp.lt.f32.partialorder %v387_v51, 0.0004427343 }
  0x53   :  { %409 = vperm.xlu2 %481, %v919_v63   ;;  %v394_v34 = vadd.f32 1.0, %v393_v23  ;;  %vm397_vm2 = vcmp.lt.f32.partialorder %v396_v58, 0.0004427343 }
  0x54   :  { %v386_v48 = vmul.f32 %v934_v5, %v385_v12 }
  0x5e   :  { %414 = vperm.xlu0 %482, %v925_v50  }
  0x9c   :  { %v357_v53 = vpop.permute.xlu2 %356 }
  0x9d   :  { %vm361_vm8 = vcmp.eq.s32.totalorder %v940_v18, %v357_v53 }
  0x9e   :  { %v462_v10 = vsel %vm361_vm8, 1.0, %v606_v9  ;;  %vm439_vm8 = vcmp.eq.s32.totalorder %v940_v18, 2 }
  0x9f   :  { %v369_v30 = vmul.f32 %v462_v10, %v928_v52 }
  0xa1   :  { %v371_v5 = vsub.f32 %v367_v26, %v369_v30 }
  0xa4   :  { %v360_v0 = vpop.permute.xlu2 %359 }
  0xa5   :  { %vm362_vm14 = vcmp.eq.s32.totalorder %v940_v18, %v360_v0 }
  0xa6   :  { %v463_v46 = vsel %vm362_vm14, 1.0, %v606_v9 }
  0xa7   :  { %v370_v53 = vmul.f32 %v463_v46, %v930_v13 }
  0xa8   :  { %v278_v55 = vpop.xlane.xlu0 %277  ;;  %v268_v54 = vpop.xlane.xlu1 %267 }
  0xa9   :  { %v286_v41 = vadd.f32 1.0, %v278_v55  ;;  %v282_v8 = vmul.f32 2.0, %v268_v54  ;;  %v372_v24 = vsub.f32 %v368_v47, %v370_v53 }
  0xab   :  { %512 = vrcp.f32 %v286_v41  ;;  %v299_v16 = vand.u32 2147483648, %v286_v41  ;;  %v297_v42 = vand.u32 2147483647, %v286_v41  ;;  %vm293_vm10 = vweird.f32 %v286_v41 }
  0xac   :  { %v284_v39 = vadd.f32 1.0, %v282_v8 }
  0xad   :  { %v300_v11 = vor.u32 1.1754944e-38, %v299_v16  ;;  %vm298_vm12 = vcmp.eq.f32.partialorder %v297_v42, 8.507059e+37  ;;  %v483_v16 = vld [vmem:[%s989_s5] ss:$0 sm:$0xff]  ;;  %v410_v9 = vpop.permute.xlu2 %409 }
  0xb0   :  { %v281_v49 = vpop.xlane.xlu0 %280  ;;  %v271_v62 = vpop.xlane.xlu1 %270 }
  0xb1   :  { %v513_v33 = vpop.eup %512  ;;  %v938_v19 = vadd.f32 1.0, %v281_v49  ;;  %v283_v3 = vmul.f32 2.0, %v271_v62 }
  0xb2   :  { %v289_v31 = vmul.f32 %v513_v33, %v286_v41  ;;  %vm294_vm9 = vweird.f32 %v513_v33 }
  0xb3   :  { %514 = vrcp.f32 %v938_v19  ;;  %vm295_vm11 = vmor %vm293_vm10, %vm294_vm9  ;;  %v312_v61 = vand.u32 2147483647, %v938_v19  ;;  %v314_v40 = vand.u32 2147483648, %v938_v19  ;;  %vm308_vm0 = vweird.f32 %v938_v19 }
  0xb4   :  { %v290_v6 = vsub.f32 1.0, %v289_v31  ;;  %516 = vlog2.f32 %v381_v37  ;;  %v285_v57 = vadd.f32 1.0, %v283_v3  ;;  %v395_v31 = vmul.f32 %v936_v60, %v394_v34 }
  0xb5   :  { %518 = vlog2.f32 %v390_v35  ;;  %v315_v4 = vor.u32 1.1754944e-38, %v314_v40  ;;  %vm313_vm6 = vcmp.eq.f32.partialorder %v312_v61, 8.507059e+37 }
  0xb6   :  { %v291_v45 = vmul.f32 %v513_v33, %v290_v6 }
  0xb8   :  { %v292_v7 = vadd.f32 %v513_v33, %v291_v45 }
  0xb9   :  { %v515_v59 = vpop.eup %514 }
  0xba   :  { %v296_v14 = vsel %vm295_vm11, %v513_v33, %v292_v7  ;;  %v304_v15 = vmul.f32 %v515_v59, %v938_v19  ;;  %v263_v1 = vpop.xlane.xlu1 %262  ;;  %v517_v36 = vpop.eup %516  ;;  %vm309_vm15 = vweird.f32 %v515_v59 }
  0xbb   :  { %v301_v29 = vsel %vm298_vm12, %v300_v11, %v296_v14  ;;  %v265_v32 = vmul.f32 0.00390625, %v263_v1  ;;  %v519_v43 = vpop.eup %518  ;;  %v383_v2 = vmul.f32 0.6931472, %v517_v36  ;;  %vm310_vm5 = vmor %vm308_vm0, %vm309_vm15 }
  0xbc   :  { %v305_v17 = vsub.f32 1.0, %v304_v15  ;;  %v302_v27 = vmul.f32 %v301_v29, %v284_v39  ;;  %v392_v19 = vmul.f32 0.6931472, %v519_v43 }
  0xbd   :  { %v321_v21 = vmul.f32 %v265_v32, %v925_v50  ;;  %v260_v22 = vpop.xlane.xlu0 %259  ;;  %v389_v33 = vsel %vm961_vm1, %v386_v48, %v383_v2 }
  0xbe   :  { %v306_v28 = vmul.f32 %v515_v59, %v305_v17  ;;  %v264_v20 = vmul.f32 0.00390625, %v260_v22  ;;  %v318_v55 = vsub.f32 1.0, %v302_v27  ;;  %v399_v35 = vadd.f32 %v389_v33, %v371_v5 }
  0xbf   :  { %v324_v56 = vsel %vm322_vm13, %v321_v21, 0.0  ;;  %v398_v13 = vsel %vm397_vm2, %v395_v31, %v392_v19 }
  0xc0   :  { %v307_v52 = vadd.f32 %v515_v59, %v306_v28  ;;  %v320_v25 = vmul.f32 %v264_v20, %v919_v63  ;;  %v335_v6 = vmul.f32 %v318_v55, %v919_v63  ;;  %v405_v7 = vmul.f32 %v483_v16, %v399_v35 }
  0xc1   :  { %v400_v60 = vadd.f32 %v398_v13, %v372_v24 }
  0xc2   :  { %v311_v54 = vsel %vm310_vm5, %v515_v59, %v307_v52  ;;  %v323_v41 = vsel %vm322_vm13, %v320_v25, 0.0  ;;  %v337_v45 = vsel %vm322_vm13, %v335_v6, 0.0  ;;  %v417_v10 = vmul.f32 %v410_v9, %v405_v7 }
  0xc3   :  { %v316_v38 = vsel %vm313_vm6, %v315_v4, %v311_v54  ;;  %v325_v49 = vadd.f32 %v324_v56, %v323_v41  ;;  %v406_v63 = vmul.f32 %v483_v16, %v400_v60 }
  0xc4   :  { %v317_v62 = vmul.f32 %v316_v38, %v285_v57  ;;  %v420_v0 = vsel %vm419_vm3, %v417_v10, 0.0 }
  0xc5   :  { %326 = vadd.xlane.f32.xlu1 %v325_v49 }
  0xc6   :  { %v319_v37 = vsub.f32 1.0, %v317_v62 }
  0xc8   :  { %v336_v23 = vmul.f32 %v319_v37, %v925_v50 }
  0xca   :  { %v338_v42 = vsel %vm322_vm13, %v336_v23, 0.0 }
  0xcb   :  { %v339_v8 = vadd.f32 %v338_v42, %v337_v45 }
  0xcd   :  { %340 = vadd.xlane.f32.xlu2 %v339_v8 }
  0xd0   :  { %v415_v59 = vpop.permute.xlu0 %414 }
  0xd1   :  { %v418_v11 = vmul.f32 %v415_v59, %v406_v63 }
  0xd3   :  { %v421_v12 = vsel %vm419_vm3, %v418_v11, 0.0 }
  0xd4   :  { %v422_v34 = vadd.f32 %v421_v12, %v420_v0 }
  0xd6   :  { %423 = vadd.xlane.f32.xlu1 %v422_v34 }
 0x138   :  { %v327_v14 = vpop.xlane.xlu1 %326 }
 0x139   :  { %v328_v50 = vrot.slane %v327_v14, 4 }
 0x13b   :  { %v329_v15 = vadd.f32 %v328_v50, %v327_v14 }
 0x13d   :  { %v330_v26 = vrot.slane %v329_v15, 2 }
 0x13f   :  { %v331_v1 = vadd.f32 %v330_v26, %v329_v15 }
 0x140   :  { %v341_v29 = vpop.xlane.xlu2 %340 }
 0x141   :  { %v342_v30 = vrot.slane %v341_v29, 4  ;;  %v332_v32 = vrot.slane %v331_v1, 1 }
 0x143   :  { %v343_v36 = vadd.f32 %v342_v30, %v341_v29  ;;  %v333_v39 = vadd.f32 %v332_v32, %v331_v1 }
 0x145   :  { %v344_v17 = vrot.slane %v343_v36, 2  ;;  %464 = vpush %v333_v39 }
 0x147   :  { %v345_v51 = vadd.f32 %v344_v17, %v343_v36 }
 0x149   :  { %v424_v61 = vpop.xlane.xlu1 %423  ;;  %v346_v40 = vrot.slane %v345_v51, 1 }
 0x14a   :  { %v425_v3 = vrot.slane %v424_v61, 4 }
 0x14b   :  { %v347_v21 = vadd.f32 %v346_v40, %v345_v51 }
 0x14c   :  { %v426_v22 = vadd.f32 %v425_v3, %v424_v61 }
 0x14d   :  { %466 = vpush %v347_v21 }
 0x14e   :  { %v427_v27 = vrot.slane %v426_v22, 2 }
 0x150   :  { %v428_v28 = vadd.f32 %v427_v27, %v426_v22 }
 0x152   :  { %v429_v20 = vrot.slane %v428_v28, 1 }
 0x154   :  { %v430_v43 = vadd.f32 %v429_v20, %v428_v28 }
 0x156   :  { %468 = vpush %v430_v43 }
 0x176   :  { %s465_s5 = spop %464 }
 0x177   :  { %v433_v47 = vstv %s465_s5 }
 0x178   :  { %v434_v48 = vsel %vm432_vm7, %v433_v47, 0.0 }
 0x17e   :  { %s467_s24 = spop %466 }
 0x17f   :  { %v436_v46 = vstv %s467_s24 }
 0x180   :  { %v437_v2 = vsel %vm435_vm4, %v436_v46, 0.0 }
 0x181   :  { %v438_v52 = vadd.f32 %v437_v2, %v434_v48 }
 0x187   :  { %s469_s27 = spop %468 }
 0x188   :  { %v440_v25 = vstv %s469_s27 }
 0x189   :  { %v441_v56 = vsel %vm439_vm8, %v440_v25, 0.0 }
 0x18a   :  { %v442_v4 = vadd.f32 %v441_v56, %v438_v52 }
 0x18c   :  { %443 = vst [vmem:[#allocation7] sm:$0xff] %v442_v4 }
 0x18d   :  { %454 = dma.vmem_to_hbm [thread:$0]  %s450_s26, 128, %s452_s30, [#allocation4]  }
 0x18e   :  { %596 = dma.done.wait [#allocation4], 128  }
 0x18f   :  { %597 = vsyncadd [#allocation4], 4294967168 }
 0x190   :  { %459 = vsyncpa [#allocation3], 1 }
 0x191   :  { %460 = vsyncpa [#allocation6], 1 }
 0x192   :  { %461 = vsyncpa [#allocation4], 1 }

</bundles_post_ra>
